<compile_context>
chip_gen: v6e
topology: v6e:2x2x1
jax: 0.10.0
libtpu: 0.0.40
codegen_flags: <defaults>
</compile_context>

<pallas_src>
from functools import partial

import jax
import jax.numpy as jnp
from jax.experimental import pallas as pl
from jax.experimental.pallas import tpu as pltpu


def _round_up(x, m):
    return (x + m - 1) // m * m


def _fused_conv_relu_maxpool_kernel(x_ref, w_ref, b_ref, m_ref, o_ref, *,
                                    n_max, seq_len):
    """Fused conv (all filter sizes) + bias + ReLU + max-over-time.

    x_ref: (TB, S_pad, E)   embedded tokens, zero-padded along time
    w_ref: (n_max, E, F_pad) per-shift weights, zero-padded across filter sizes
    b_ref: (1, F_pad)        bias (zero in padding columns)
    m_ref: (S, F_pad)        1.0 where t is a valid conv position for that column
    o_ref: (TB, F_pad)       lane-dense pooled output
    """
    x = x_ref[...]
    acc = None
    # Static unroll over the few shifts.  Every window has the full length
    # `seq_len` (multiple of 8), so no per-filter ragged slices; zero-padded
    # weight rows make shift i >= n a no-op for a filter of size n.
    for i in range(n_max):
        xi = x[:, i:i + seq_len, :]                                 # (TB, S, E)
        contrib = jnp.einsum("bse,ef->bsf", xi, w_ref[i],
                             preferred_element_type=jnp.float32)    # (TB, S, Fp)
        acc = contrib if acc is None else acc + contrib
    acc = acc + b_ref[...][None]                 # bias, hoisted out of the loop
    # ReLU, then zero the invalid tail positions (t > S - n).  Masking with 0
    # is safe because ReLU output is >= 0, so the time-max is unchanged.
    acc = jnp.maximum(acc, 0.0) * m_ref[...][None]
    o_ref[...] = jnp.max(acc, axis=1)            # (TB, F_pad), full-lane store


def _choose_batch_tile(batch, s_pad, s_out, embed_dim, f_pad,
                       budget_bytes=8 << 20):
    """Largest sublane-aligned batch tile whose per-step working set fits a
    conservative VMEM budget (safe on v5e/v6e 128 MiB and v7x 64 MiB; well
    under the 32 MiB scoped default, so double-buffering stays alive)."""
    per_row_bytes = 4 * (2 * s_pad * embed_dim      # x tile (double-buffered)
                         + s_out * embed_dim        # one shifted-window copy
                         + 2 * s_out * f_pad        # f32 conv accumulator
                         + 2 * f_pad)               # output row (double-buffered)
    tb = budget_bytes // max(per_row_bytes, 1)
    tb = int(max(8, min(tb, 256)))
    tb = (tb // 8) * 8                              # keep output block 8-aligned
    return min(tb, _round_up(batch, 8))


def fused_conv_relu_maxpool(x_emb, w_all, b_all, mask, n_max):
    """One pallas_call for every filter size; returns (B, F_pad) pooled features."""
    B, S, E = x_emb.shape
    f_pad = w_all.shape[-1]
    s_pad = _round_up(S + n_max - 1, 8)     # full-length windows for every shift
    tb = _choose_batch_tile(B, s_pad, S, E, f_pad)
    b_pad = _round_up(B, tb)
    x_emb = jnp.pad(x_emb, ((0, b_pad - B), (0, s_pad - S), (0, 0)))

    kernel = partial(_fused_conv_relu_maxpool_kernel, n_max=n_max, seq_len=S)
    out = pl.pallas_call(
        kernel,
        out_shape=jax.ShapeDtypeStruct((b_pad, f_pad), jnp.float32),
        grid=(b_pad // tb,),
        in_specs=[
            pl.BlockSpec((tb, s_pad, E), lambda i: (i, 0, 0)),     # batch-tiled
            pl.BlockSpec((n_max, E, f_pad), lambda i: (0, 0, 0)),  # VMEM-resident
            pl.BlockSpec((1, f_pad), lambda i: (0, 0)),
            pl.BlockSpec((S, f_pad), lambda i: (0, 0)),
        ],
        out_specs=pl.BlockSpec((tb, f_pad), lambda i: (i, 0)),
        compiler_params=pltpu.CompilerParams(
            dimension_semantics=("parallel",)),
    )(x_emb, w_all, b_all, mask)
    return out[:B]


def pack_fused_params(conv_weights, conv_biases, filter_list, seq_len, embed_dim):
    """Pack per-filter-size conv params into one zero-padded, lane-dense set.

    conv_weights[k]: (n_k, E, F) (torch (F,1,n,E) already transposed)
    conv_biases[k]:  (1, F)
    """
    num_f = conv_weights[0].shape[-1]
    f_total = num_f * len(filter_list)
    f_pad = _round_up(f_total, 128)           # lane-dense output slab
    n_max = max(filter_list)

    w_all = jnp.zeros((n_max, embed_dim, f_pad), jnp.float32)
    b_all = jnp.zeros((1, f_pad), jnp.float32)
    col_n = jnp.full((f_pad,), seq_len + 1, dtype=jnp.int32)  # pad cols: never valid
    for k, (n, w, b) in enumerate(zip(filter_list, conv_weights, conv_biases)):
        lo = k * num_f
        w_all = w_all.at[:n, :, lo:lo + num_f].set(w.astype(jnp.float32))
        b_all = b_all.at[0, lo:lo + num_f].set(
            jnp.reshape(b, (-1,)).astype(jnp.float32))
        col_n = col_n.at[lo:lo + num_f].set(n)
    # mask[t, c] = 1 iff t <= S - n_c (valid conv output position for column c)
    t = jnp.arange(seq_len, dtype=jnp.int32)[:, None]
    mask = (t <= (seq_len - col_n)[None, :]).astype(jnp.float32)   # (S, F_pad)
    return w_all, b_all, mask, f_total, n_max


def multitask_convnet_forward(token_ids, embed_matrix, conv_weights,
                              conv_biases, filter_list):
    # Embedding lookup (gather) stays in plain JAX glue.
    x_emb = jnp.take(embed_matrix, token_ids, axis=0).astype(jnp.float32)  # (B,S,E)
    B, S, E = x_emb.shape
    w_all, b_all, mask, f_total, n_max = pack_fused_params(
        conv_weights, conv_biases, filter_list, S, E)
    pooled = fused_conv_relu_maxpool(x_emb, w_all, b_all, mask, n_max)
    # torch: cat over channels -> dropout (eval = identity) -> squeeze()
    return pooled[:, :f_total]


def multitask_convnet_reference(token_ids, embed_matrix, conv_weights,
                                conv_biases, filter_list):
    """Pure-JAX reference matching the PyTorch forward (eval mode)."""
    x = jnp.take(embed_matrix, token_ids, axis=0).astype(jnp.float32)
    outs = []
    for n, w, b in zip(filter_list, conv_weights, conv_biases):
        L = x.shape[1] - n + 1
        conv = jnp.zeros((x.shape[0], L, w.shape[-1]), jnp.float32)
        for i in range(n):
            conv = conv + jnp.einsum("ble,ef->blf", x[:, i:i + L, :], w[i],
                                     preferred_element_type=jnp.float32)
        conv = jnp.maximum(conv + b[:, None, :], 0.0)
        outs.append(jnp.max(conv, axis=1))
    return jnp.concatenate(outs, axis=1)


if __name__ == "__main__":
    key = jax.random.PRNGKey(0)
    B, S = 2, 16                 # batch, sequence length (token ids)
    vocab, E = 64, 32            # embedding matrix shape
    num_filters = 8              # out_channels per conv
    filter_list = [2, 3, 4]      # conv kernel heights

    keys = jax.random.split(key, 2 + 2 * len(filter_list))
    k_emb, k_ids = keys[0], keys[1]
    k_ws = keys[2:]

    embed_matrix = jax.random.normal(k_emb, (vocab, E), dtype=jnp.float32)
    token_ids = jax.random.randint(k_ids, (B, S), 0, vocab)

    conv_weights, conv_biases = [], []
    for idx, n in enumerate(filter_list):
        kw, kb = k_ws[2 * idx], k_ws[2 * idx + 1]
        fan_in = 1 * n * E                            # torch Conv2d default init
        bound = 1.0 / (fan_in ** 0.5)
        w_torch = jax.random.uniform(
            kw, (num_filters, 1, n, E), minval=-bound, maxval=bound,
            dtype=jnp.float32)                        # torch layout (F,1,n,E)
        b = jax.random.uniform(
            kb, (1, num_filters), minval=-bound, maxval=bound,
            dtype=jnp.float32)
        # (F, 1, n, E) -> (n, E, F) for the kernel's windowed matmuls
        w = jnp.transpose(w_torch[:, 0, :, :], (1, 2, 0))
        conv_weights.append(w)
        conv_biases.append(b)

    out = multitask_convnet_forward(
        token_ids, embed_matrix, conv_weights, conv_biases, filter_list)
    out = jax.block_until_ready(out)
    assert out.shape == (B, num_filters * len(filter_list)), out.shape
    assert out.dtype == jnp.float32

    ref = jax.block_until_ready(multitask_convnet_reference(
        token_ids, embed_matrix, conv_weights, conv_biases, filter_list))
    max_err = float(jnp.max(jnp.abs(out - ref)))
    assert max_err < 5e-2, f"kernel vs reference max |err| = {max_err}"
    print("KERNEL_OK")
</pallas_src>

<mosaic_0001>
module attributes {stable_mosaic.version = 11 : i64} {
  func.func @_fused_conv_relu_maxpool_kernel(%arg0: i32, %arg1: memref<8x24x32xf32, #tpu.memory_space<vmem>>, %arg2: memref<4x32x128xf32, #tpu.memory_space<vmem>>, %arg3: memref<1x128xf32, #tpu.memory_space<vmem>>, %arg4: memref<16x128xf32, #tpu.memory_space<vmem>>, %arg5: memref<8x128xf32, #tpu.memory_space<vmem>>) attributes {dimension_semantics = [#tpu.dimension_semantics<parallel>], iteration_bounds = array<i64: 1>, scalar_prefetch = 0 : i64, scratch_operands = 0 : i64, tpu.core_type = #tpu.core_type<tc>, window_params = [{transform_indices = @transform_0, window_bounds = array<i64: 8, 24, 32>}, {pipeline_mode = #tpu.pipeline_mode<synchronous>, transform_indices = @transform_1, window_bounds = array<i64: 4, 32, 128>}, {pipeline_mode = #tpu.pipeline_mode<synchronous>, transform_indices = @transform_2, window_bounds = array<i64: 1, 128>}, {pipeline_mode = #tpu.pipeline_mode<synchronous>, transform_indices = @transform_3, window_bounds = array<i64: 16, 128>}, {transform_indices = @transform_4, window_bounds = array<i64: 8, 128>}]} {
    %c0 = arith.constant 0 : index
    %c0_0 = arith.constant 0 : index
    %c0_1 = arith.constant 0 : index
    %0 = vector.load %arg1[%c0, %c0_0, %c0_1] : memref<8x24x32xf32, #tpu.memory_space<vmem>>, vector<8x24x32xf32>
    %1 = vector.extract_strided_slice %0 {offsets = [0, 0, 0], sizes = [8, 16, 32], strides = [1, 1, 1]} : vector<8x24x32xf32> to vector<8x16x32xf32>
    %c0_2 = arith.constant 0 : index
    %c0_3 = arith.constant 0 : index
    %c0_4 = arith.constant 0 : index
    %2 = vector.load %arg2[%c0_2, %c0_3, %c0_4] : memref<4x32x128xf32, #tpu.memory_space<vmem>>, vector<1x32x128xf32>
    %3 = vector.shape_cast %2 : vector<1x32x128xf32> to vector<32x128xf32>
    "tpu.trace_start"() <{level = 10 : i32, message = "bse,ef->bsf"}> : () -> ()
    %cst = arith.constant dense<0.000000e+00> : vector<8x16x128xf32>
    %4 = tpu.matmul %1, %3, %cst {dimension_numbers = #tpu.dot_dimension_numbers<[2], [0], [0, 1], [1], [0, 0, 0, 1, 1, 1], [], []>} : vector<8x16x32xf32>, vector<32x128xf32>, vector<8x16x128xf32> -> vector<8x16x128xf32>
    "tpu.trace_stop"() : () -> ()
    %5 = vector.extract_strided_slice %0 {offsets = [0, 1, 0], sizes = [8, 16, 32], strides = [1, 1, 1]} : vector<8x24x32xf32> to vector<8x16x32xf32>
    %c1 = arith.constant 1 : index
    %c0_5 = arith.constant 0 : index
    %c0_6 = arith.constant 0 : index
    %6 = vector.load %arg2[%c1, %c0_5, %c0_6] : memref<4x32x128xf32, #tpu.memory_space<vmem>>, vector<1x32x128xf32>
    %7 = vector.shape_cast %6 : vector<1x32x128xf32> to vector<32x128xf32>
    "tpu.trace_start"() <{level = 10 : i32, message = "bse,ef->bsf"}> : () -> ()
    %cst_7 = arith.constant dense<0.000000e+00> : vector<8x16x128xf32>
    %8 = tpu.matmul %5, %7, %cst_7 {dimension_numbers = #tpu.dot_dimension_numbers<[2], [0], [0, 1], [1], [0, 0, 0, 1, 1, 1], [], []>} : vector<8x16x32xf32>, vector<32x128xf32>, vector<8x16x128xf32> -> vector<8x16x128xf32>
    "tpu.trace_stop"() : () -> ()
    %9 = arith.addf %4, %8 : vector<8x16x128xf32>
    %10 = vector.extract_strided_slice %0 {offsets = [0, 2, 0], sizes = [8, 16, 32], strides = [1, 1, 1]} : vector<8x24x32xf32> to vector<8x16x32xf32>
    %c2 = arith.constant 2 : index
    %c0_8 = arith.constant 0 : index
    %c0_9 = arith.constant 0 : index
    %11 = vector.load %arg2[%c2, %c0_8, %c0_9] : memref<4x32x128xf32, #tpu.memory_space<vmem>>, vector<1x32x128xf32>
    %12 = vector.shape_cast %11 : vector<1x32x128xf32> to vector<32x128xf32>
    "tpu.trace_start"() <{level = 10 : i32, message = "bse,ef->bsf"}> : () -> ()
    %cst_10 = arith.constant dense<0.000000e+00> : vector<8x16x128xf32>
    %13 = tpu.matmul %10, %12, %cst_10 {dimension_numbers = #tpu.dot_dimension_numbers<[2], [0], [0, 1], [1], [0, 0, 0, 1, 1, 1], [], []>} : vector<8x16x32xf32>, vector<32x128xf32>, vector<8x16x128xf32> -> vector<8x16x128xf32>
    "tpu.trace_stop"() : () -> ()
    %14 = arith.addf %9, %13 : vector<8x16x128xf32>
    %15 = vector.extract_strided_slice %0 {offsets = [0, 3, 0], sizes = [8, 16, 32], strides = [1, 1, 1]} : vector<8x24x32xf32> to vector<8x16x32xf32>
    %c3 = arith.constant 3 : index
    %c0_11 = arith.constant 0 : index
    %c0_12 = arith.constant 0 : index
    %16 = vector.load %arg2[%c3, %c0_11, %c0_12] : memref<4x32x128xf32, #tpu.memory_space<vmem>>, vector<1x32x128xf32>
    %17 = vector.shape_cast %16 : vector<1x32x128xf32> to vector<32x128xf32>
    "tpu.trace_start"() <{level = 10 : i32, message = "bse,ef->bsf"}> : () -> ()
    %cst_13 = arith.constant dense<0.000000e+00> : vector<8x16x128xf32>
    %18 = tpu.matmul %15, %17, %cst_13 {dimension_numbers = #tpu.dot_dimension_numbers<[2], [0], [0, 1], [1], [0, 0, 0, 1, 1, 1], [], []>} : vector<8x16x32xf32>, vector<32x128xf32>, vector<8x16x128xf32> -> vector<8x16x128xf32>
    "tpu.trace_stop"() : () -> ()
    %19 = arith.addf %14, %18 : vector<8x16x128xf32>
    %c0_14 = arith.constant 0 : index
    %c0_15 = arith.constant 0 : index
    %20 = vector.load %arg3[%c0_14, %c0_15] : memref<1x128xf32, #tpu.memory_space<vmem>>, vector<1x128xf32>
    %21 = vector.shape_cast %20 : vector<1x128xf32> to vector<1x1x128xf32>
    %22 = vector.broadcast %21 : vector<1x1x128xf32> to vector<8x16x128xf32>
    %23 = arith.addf %19, %22 : vector<8x16x128xf32>
    %cst_16 = arith.constant 0.000000e+00 : f32
    %24 = vector.broadcast %cst_16 : f32 to vector<8x16x128xf32>
    %25 = arith.maximumf %23, %24 : vector<8x16x128xf32>
    %c0_17 = arith.constant 0 : index
    %c0_18 = arith.constant 0 : index
    %26 = vector.load %arg4[%c0_17, %c0_18] : memref<16x128xf32, #tpu.memory_space<vmem>>, vector<16x128xf32>
    %27 = vector.shape_cast %26 : vector<16x128xf32> to vector<1x16x128xf32>
    %28 = vector.broadcast %27 : vector<1x16x128xf32> to vector<8x16x128xf32>
    %29 = arith.mulf %25, %28 : vector<8x16x128xf32>
    %cst_19 = arith.constant dense<0xFF800000> : vector<8x128xf32>
    %30 = vector.multi_reduction <maximumf>, %29, %cst_19 [1] : vector<8x16x128xf32> to vector<8x128xf32>
    %c0_20 = arith.constant 0 : index
    %c0_21 = arith.constant 0 : index
    %31 = vector.load %arg5[%c0_20, %c0_21] : memref<8x128xf32, #tpu.memory_space<vmem>>, vector<8x128xf32>
    tpu.vector_store %arg5[%c0_20, %c0_21], %30 {strides = array<i32>} : memref<8x128xf32, #tpu.memory_space<vmem>>, vector<8x128xf32>,
    return
  }
  func.func @transform_0(%arg0: i32) -> (i32, i32, i32) {
    %c0_i32 = arith.constant 0 : i32
    %c0_i32_0 = arith.constant 0 : i32
    %c0_i32_1 = arith.constant 0 : i32
    return %arg0, %c0_i32, %c0_i32_0 : i32, i32, i32
  }
  func.func @transform_1(%arg0: i32) -> (i32, i32, i32) {
    %c0_i32 = arith.constant 0 : i32
    %c0_i32_0 = arith.constant 0 : i32
    %c0_i32_1 = arith.constant 0 : i32
    %c0_i32_2 = arith.constant 0 : i32
    return %c0_i32, %c0_i32_0, %c0_i32_1 : i32, i32, i32
  }
  func.func @transform_2(%arg0: i32) -> (i32, i32) {
    %c0_i32 = arith.constant 0 : i32
    %c0_i32_0 = arith.constant 0 : i32
    %c0_i32_1 = arith.constant 0 : i32
    return %c0_i32, %c0_i32_0 : i32, i32
  }
  func.func @transform_3(%arg0: i32) -> (i32, i32) {
    %c0_i32 = arith.constant 0 : i32
    %c0_i32_0 = arith.constant 0 : i32
    %c0_i32_1 = arith.constant 0 : i32
    return %c0_i32, %c0_i32_0 : i32, i32
  }
  func.func @transform_4(%arg0: i32) -> (i32, i32) {
    %c0_i32 = arith.constant 0 : i32
    %c0_i32_0 = arith.constant 0 : i32
    return %arg0, %c0_i32 : i32, i32
  }
}

</mosaic_0001>

<bundles_post_ra>
// kernel: tpu_custom_call.1
= control target key start
LH: loop header
LB: loop body
LE: loop exit
PB: predicated region body
PF: predicated region fallthrough
CT: control target
= control target key end

     0   :  { %9 = vsyncpa [#allocation3], 0  ;;  %s1888_s0 = inlined_call_operand.hbm [shape: f32[8,24,32], index: 0, kind: input, shape index: {}]   ;;  %s1889_s1 = inlined_call_operand.hbm [shape: f32[4,32,128], index: 1, kind: input, shape index: {}]   ;;  %s1890_s2 = inlined_call_operand.vmem [shape: f32[1,128], index: 2, kind: input, shape index: {}]   ;;  %s1891_s3 = inlined_call_operand.hbm [shape: f32[16,128], index: 3, kind: input, shape index: {}]   ;;  %s1892_s4 = inlined_call_operand.hbm [shape: f32[8,128], index: 4, kind: output, shape index: {}]  }
   0x1   :  { %10 = vsyncpa [#allocation6], 0 }
   0x2   :  { %11 = vsyncpa [#allocation4], 0  ;;  %s1508_s15 = smov [#allocation5]   ;;  %s1509_s17 = smov [#allocation2]  }
   0x3   :  { %s29_s16 = sshll.u32 %s1508_s15, 4  ;;  %s17_s18 = sshll.u32 %s1509_s17, 4  ;;  %s30_s16 = int_to_ptr.vmem [resolvable:$true] %s29_s16  ;;  %s18_s18 = int_to_ptr.vmem [resolvable:$true] %s17_s18 }
   0x4   :  { %s1430_s19 = scalar_lea.vmem %s30_s16, 2048  ;;  %p1435_p1 = scmp.lt.s32.totalorder %s30_s16, %s30_s16 }
   0x5   :  { %p1431_p0 = scmp.ne.s32.totalorder %s30_s16, %s1430_s19  ;;  %p1436_p2 = scmp.lt.s32.totalorder %s1430_s19, %s1430_s19 }
   0x7   :  { %p1437_p3 = por %p1436_p2, %p1435_p1 }
   0x9   :  { %p1438_p4 = pnand %p1437_p3, %p1431_p0 }
   0xb   :  { %1441 = shalt.err (!%p1438_p4)
}
   0xc   :  { %s1510_s20 = smov 128   ;;  %s1511_s21 = smov 8  }
   0xd   :  { %35 = dma.hbm_to_vmem [thread:$0]  %s1889_s1, 2048, %s30_s16, [#allocation6], %s1510_s20, %s1510_s20, %s1511_s21  }
   0xe   :  { %s1450_s24 = scalar_lea.vmem %s18_s18, 3072  ;;  %p1455_p6 = scmp.lt.s32.totalorder %s18_s18, %s18_s18 }
   0xf   :  { %p1451_p5 = scmp.ne.s32.totalorder %s18_s18, %s1450_s24  ;;  %p1456_p7 = scmp.lt.s32.totalorder %s1450_s24, %s1450_s24 }
  0x11   :  { %p1457_p8 = por %p1456_p7, %p1455_p6 }
  0x13   :  { %p1458_p9 = pnand %p1457_p8, %p1451_p5 }
  0x15   :  { %1461 = shalt.err (!%p1458_p9)
}
  0x16   :  { %23 = dma.hbm_to_vmem [thread:$0]  %s1888_s0, 3072, %s18_s18, [#allocation3], %s1510_s20, %s1510_s20, %s1511_s21  }
  0x17   :  { %s1512_s27 = smov [#allocation7]  }
  0x18   :  { %s43_s28 = sshll.u32 %s1512_s27, 4  ;;  %s44_s28 = int_to_ptr.vmem [resolvable:$true] %s43_s28 }
  0x19   :  { %s1470_s29 = scalar_lea.vmem %s44_s28, 256  ;;  %p1475_p11 = scmp.lt.s32.totalorder %s44_s28, %s44_s28 }
  0x1a   :  { %p1471_p10 = scmp.ne.s32.totalorder %s44_s28, %s1470_s29  ;;  %p1476_p12 = scmp.lt.s32.totalorder %s1470_s29, %s1470_s29 }
  0x1c   :  { %p1477_p13 = por %p1476_p12, %p1475_p11 }
  0x1e   :  { %p1478_p0 = pnand %p1477_p13, %p1471_p10 }
  0x20   :  { %1481 = shalt.err (!%p1478_p0)
}
  0x21   :  { %49 = dma.hbm_to_vmem [thread:$0]  %s1891_s3, 256, %s44_s28, [#allocation6], %s1510_s20, %s1510_s20, %s1511_s21  }
  0x22   :  { %1502 = dma.done.wait [#allocation3], 3072  }
  0x23   :  { %1503 = vsyncadd [#allocation3], 4294964224 }
  0x24   :  { %1504 = dma.done.wait [#allocation6], 2304  }
  0x25   :  { %1505 = vsyncadd [#allocation6], 4294964992  ;;  %v91_v0 = vld [vmem:[#allocation5 + $0x38] sm:$0xff]  ;;  %v90_v2 = vld [vmem:[#allocation5 + $0x30] sm:$0xff]  ;;  %vm116_vm0 = vcmask 1046528   ;;  %vm157_vm1 = vcmask 261120  }
  0x26   :  { %v86_v1 = vld [vmem:[#allocation5 + $0x18] sm:$0xff]  ;;  %1288 = vmatprep.subr.mxu0 %v91_v0  ;;  %v85_v3 = vld [vmem:[#allocation5 + $0x10] sm:$0xff]  ;;  %v89_v4 = vld [vmem:[#allocation5 + $0x28] sm:$0xff]  ;;  %vm517_vm2 = vcmask 1045504   ;;  %vm756_vm3 = vcmask 1044480   ;;  %vm1111_vm4 = vcmask 1041409  }
  0x27   :  { %1320 = vmatprep.subr.mxu1 %v86_v1  ;;  %1289 = vmatpush3.msra.mxu0 %v91_v0  ;;  %v84_v5 = vld [vmem:[#allocation5 + $0x8] sm:$0xff]  ;;  %v1548_v6 = vld [vmem:[#allocation2] sm:$0xff]  ;;  %v1553_v9 = vld [vmem:[#allocation2 + $0x10] sm:$0xff]  ;;  %vm1113_vm5 = vcmask 1042434   ;;  %vm1115_vm6 = vcmask 1043459   ;;  %vm1117_vm7 = vcmask 1044484  }
  0x28   :  { %1321 = vmatpush3.msra.mxu1 %v86_v1  ;;  %1290 = vmatprep.subr.mxu0 %v90_v2  ;;  %v1550_v7 = vld [vmem:[#allocation2 + $0x8] sm:$0xff]  ;;  %v117_v8 = vrot.slane %v1548_v6, 1  ;;  %v88_v10 = vld [vmem:[#allocation5 + $0x20] sm:$0xff]  ;;  %v120_v13 = vrot.slane %v1553_v9, 1  ;;  %v1557_v14 = vld [vmem:[#allocation2 + $0x18] sm:$0xff]  ;;  %vm1119_vm8 = vcmask 1045509  }
  0x29   :  { %1322 = vmatprep.subr.mxu1 %v85_v3  ;;  %1291 = vmatpush3.msra.mxu0 %v90_v2  ;;  %v83_v11 = vld [vmem:[#allocation5] sm:$0xff]  ;;  %v118_v12 = vrot.slane %v1550_v7, 1  ;;  %v122_v16 = vrot.slane %v1557_v14, 1  ;;  %v1562_v17 = vld [vmem:[#allocation2 + $0x28] sm:$0xff]  ;;  %v1564_v18 = vld [vmem:[#allocation2 + $0x30] sm:$0xff]  ;;  %vm1121_vm9 = vcmask 1046534  }
  0x2a   :  { %1323 = vmatpush3.msra.mxu1 %v85_v3  ;;  %1292 = vmatprep.subr.mxu0 %v89_v4  ;;  %v1559_v15 = vld [vmem:[#allocation2 + $0x20] sm:$0xff]  ;;  %v1568_v21 = vld [vmem:[#allocation2 + $0x38] sm:$0xff]  ;;  %v125_v23 = vrot.slane %v1562_v17, 1  ;;  %v127_v26 = vrot.slane %v1564_v18, 1  ;;  %v1580_v30 = vld [vmem:[#allocation2 + $0x48] sm:$0xff]  ;;  %vm1123_vm10 = vcmask 1047559  }
  0x2b   :  { %1324 = vmatprep.subr.mxu1 %v84_v5  ;;  %1293 = vmatpush3.msra.mxu0 %v89_v4  ;;  %v119_v19 = vsel %vm116_vm0, %v117_v8, %v118_v12  ;;  %v123_v20 = vrot.slane %v1559_v15, 1  ;;  %v121_v22 = vsel %vm116_vm0, %v118_v12, %v120_v13  ;;  %v516_v24 = vld [vmem:[#allocation5 + $0x58] sm:$0xff]  ;;  %v128_v27 = vrot.slane %v1568_v21, 1  ;;  %v1575_v28 = vld [vmem:[#allocation2 + $0x40] sm:$0xff]  ;;  %v1582_v31 = vld [vmem:[#allocation2 + $0x50] sm:$0xff] }
  0x2c   :  { %1325 = vmatpush3.msra.mxu1 %v84_v5  ;;  %1294 = vmatprep.subr.mxu0 %v88_v10  ;;  %v755_v25 = vld [vmem:[#allocation5 + $0x78] sm:$0xff]  ;;  %v130_v33 = vrot.slane %v1575_v28, 1  ;;  %v515_v35 = vld [vmem:[#allocation5 + $0x50] sm:$0xff]  ;;  %v132_v36 = vrot.slane %v1580_v30, 1  ;;  %v133_v37 = vrot.slane %v1582_v31, 1  ;;  %v1597_v40 = vld [vmem:[#allocation2 + $0x60] sm:$0xff] }
  0x2d   :  { %1326 = vmatprep.subr.mxu1 %v83_v11  ;;  %1295 = vmatpush3.msra.mxu0 %v88_v10  ;;  %v124_v29 = vsel %vm116_vm0, %v122_v16, %v123_v20  ;;  %v126_v32 = vsel %vm116_vm0, %v123_v20, %v125_v23  ;;  %v129_v34 = vsel %vm116_vm0, %v127_v26, %v128_v27  ;;  %v1593_v38 = vld [vmem:[#allocation2 + $0x58] sm:$0xff]  ;;  %v754_v39 = vld [vmem:[#allocation5 + $0x70] sm:$0xff]  ;;  %v1599_v41 = vld [vmem:[#allocation2 + $0x68] sm:$0xff]  ;;  %v137_v45 = vrot.slane %v1597_v40, 1 }
  0x2e   :  { %1296 = vmatprep.mubr.msk.f32.mxu0 %vm157_vm1, %v119_v19  ;;  %1327 = vmatpush3.msra.mxu1 %v83_v11  ;;  %v131_v42 = vsel %vm116_vm0, %v128_v27, %v130_v33  ;;  %v135_v43 = vrot.slane %v1593_v38, 1  ;;  %v134_v44 = vsel %vm116_vm0, %v132_v36, %v133_v37  ;;  %v138_v46 = vrot.slane %v1599_v41, 1  ;;  %v1612_v47 = vld [vmem:[#allocation2 + $0x70] sm:$0xff]  ;;  %v514_v48 = vld [vmem:[#allocation5 + $0x48] sm:$0xff]  ;;  %v1614_v50 = vld [vmem:[#allocation2 + $0x78] sm:$0xff] }
  0x2f   :  { %1328 = vmatprep.mubr.msk.f32.mxu1 %vm157_vm1, %v1548_v6  ;;  %1297 = vmatmul.mubr.msk.f32.vlgmr.msra.gmra.mxu0 %vm157_vm1, %v121_v22  ;;  %v753_v49 = vld [vmem:[#allocation5 + $0x68] sm:$0xff]  ;;  %v1616_v51 = vld [vmem:[#allocation2 + $0x80] sm:$0xff]  ;;  %v140_v53 = vrot.slane %v1612_v47, 1  ;;  %v142_v55 = vrot.slane %v1614_v50, 1  ;;  %v1631_v58 = vld [vmem:[#allocation2 + $0x90] sm:$0xff]  ;;  %v518_v19 = vrot.slane %v1548_v6, 2 }
  0x30   :  { %1329 = vmatmul.mubr.msk.f32.vlgmr.msra.gmra.mxu1 %vm157_vm1, %v1550_v7  ;;  %1352 = vmatprep.subr.mxu0 %v516_v24  ;;  %v136_v52 = vsel %vm116_vm0, %v133_v37, %v135_v43  ;;  %v139_v54 = vsel %vm116_vm0, %v137_v45, %v138_v46  ;;  %v143_v56 = vrot.slane %v1616_v51, 1  ;;  %v1629_v57 = vld [vmem:[#allocation2 + $0x88] sm:$0xff]  ;;  %v1633_v59 = vld [vmem:[#allocation2 + $0x98] sm:$0xff]  ;;  %v513_v60 = vld [vmem:[#allocation5 + $0x40] sm:$0xff]  ;;  %v147_v1 = vrot.slane %v1631_v58, 1 }
  0x31   :  { %1384 = vmatprep.subr.mxu1 %v755_v25  ;;  %1353 = vmatpush3.msra.mxu0 %v516_v24  ;;  %v752_v61 = vld [vmem:[#allocation5 + $0x60] sm:$0xff]  ;;  %v141_v62 = vsel %vm116_vm0, %v138_v46, %v140_v53  ;;  %v145_v63 = vrot.slane %v1629_v57, 1  ;;  %v148_v2 = vrot.slane %v1633_v59, 1  ;;  %v1648_v4 = vld [vmem:[#allocation2 + $0xa8] sm:$0xff]  ;;  %v1650_v5 = vld [vmem:[#allocation2 + $0xb0] sm:$0xff]  ;;  %v757_v20 = vrot.slane %v1548_v6, 3 }
  0x32   :  { %1299 = vmatprep.mubr.msk.f32.mxu0 %vm157_vm1, %v124_v29  ;;  %1331 = vmatprep.mubr.msk.f32.mxu1 %vm157_vm1, %v1557_v14  ;;  %v144_v0 = vsel %vm116_vm0, %v142_v55, %v143_v56  ;;  %v1646_v3 = vld [vmem:[#allocation2 + $0xa0] sm:$0xff]  ;;  %v152_v12 = vrot.slane %v1648_v4, 1  ;;  %v153_v13 = vrot.slane %v1650_v5, 1  ;;  %v1663_v16 = vld [vmem:[#allocation2 + $0xb8] sm:$0xff]  ;;  %v519_v24 = vrot.slane %v1550_v7, 2 }
  0x33   :  { %1385 = vmatpush3.msra.mxu1 %v755_v25  ;;  %1300 = vmatmul.mubr.msk.f32.gmra.mxu0 %vm157_vm1, %v126_v32  ;;  %v146_v8 = vsel %vm116_vm0, %v143_v56, %v145_v63  ;;  %v150_v10 = vrot.slane %v1646_v3, 1  ;;  %v149_v11 = vsel %vm116_vm0, %v147_v1, %v148_v2  ;;  %v155_v23 = vrot.slane %v1663_v16, 1 }
  0x34   :  { %1332 = vmatmul.mubr.msk.f32.gmra.mxu1 %vm157_vm1, %v1559_v15  ;;  %1302 = vmatprep.mubr.msk.f32.mxu0 %vm157_vm1, %v129_v34  ;;  %v758_v25 = vrot.slane %v1550_v7, 3  ;;  %v154_v26 = vsel %vm116_vm0, %v152_v12, %v153_v13  ;;  %v521_v27 = vrot.slane %v1553_v9, 2  ;;  %v760_v6 = vrot.slane %v1553_v9, 3 }
  0x35   :  { %1334 = vmatprep.mubr.msk.f32.mxu1 %vm157_vm1, %v1564_v18  ;;  %1354 = vmatprep.subr.mxu0 %v515_v35  ;;  %v151_v22 = vsel %vm116_vm0, %v148_v2, %v150_v10  ;;  %v156_v7 = vsel %vm116_vm0, %v153_v13, %v155_v23  ;;  %v520_v29 = vsel %vm517_vm2, %v518_v19, %v519_v24  ;;  %v523_v33 = vrot.slane %v1557_v14, 2 }
  0x36   :  { %1386 = vmatprep.subr.mxu1 %v754_v39  ;;  %1355 = vmatpush3.msra.mxu0 %v515_v35  ;;  %v759_v32 = vsel %vm756_vm3, %v757_v20, %v758_v25  ;;  %v524_v34 = vrot.slane %v1559_v15, 2  ;;  %v762_v35 = vrot.slane %v1557_v14, 3  ;;  %v763_v36 = vrot.slane %v1559_v15, 3 }
  0x37   :  { %1387 = vmatpush3.msra.mxu1 %v754_v39  ;;  %1303 = vmatmul.mubr.msk.f32.gmra.mxu0 %vm157_vm1, %v131_v42  ;;  %v522_v9 = vsel %vm517_vm2, %v519_v24, %v521_v27  ;;  %v526_v37 = vrot.slane %v1562_v17, 2  ;;  %v761_v39 = vsel %vm756_vm3, %v758_v25, %v760_v6  ;;  %v765_v42 = vrot.slane %v1562_v17, 3 }
  0x38   :  { %1335 = vmatmul.mubr.msk.f32.gmra.mxu1 %vm157_vm1, %v1568_v21  ;;  %1305 = vmatprep.mubr.msk.f32.mxu0 %vm157_vm1, %v134_v44  ;;  %v528_v14 = vrot.slane %v1564_v18, 2  ;;  %v529_v15 = vrot.slane %v1568_v21, 2  ;;  %v525_v43 = vsel %vm517_vm2, %v523_v33, %v524_v34  ;;  %v764_v44 = vsel %vm756_vm3, %v762_v35, %v763_v36 }
  0x39   :  { %1337 = vmatprep.mubr.msk.f32.mxu1 %vm157_vm1, %v1580_v30  ;;  %1356 = vmatprep.subr.mxu0 %v514_v48  ;;  %v767_v45 = vrot.slane %v1564_v18, 3  ;;  %v768_v46 = vrot.slane %v1568_v21, 3  ;;  %v531_v17 = vrot.slane %v1575_v28, 2  ;;  %v770_v18 = vrot.slane %v1575_v28, 3 }
  0x3a   :  { %1388 = vmatprep.subr.mxu1 %v753_v49  ;;  %1357 = vmatpush3.msra.mxu0 %v514_v48  ;;  %v527_v48 = vsel %vm517_vm2, %v524_v34, %v526_v37  ;;  %v533_v21 = vrot.slane %v1580_v30, 2  ;;  %v772_v55 = vrot.slane %v1580_v30, 3  ;;  %v773_v56 = vrot.slane %v1582_v31, 3 }
  0x3b   :  { %1389 = vmatpush3.msra.mxu1 %v753_v49  ;;  %1306 = vmatmul.mubr.msk.f32.gmra.mxu0 %vm157_vm1, %v136_v52  ;;  %v766_v49 = vsel %vm756_vm3, %v763_v36, %v765_v42  ;;  %v530_v52 = vsel %vm517_vm2, %v528_v14, %v529_v15  ;;  %v769_v53 = vsel %vm756_vm3, %v767_v45, %v768_v46  ;;  %v538_v30 = vrot.slane %v1597_v40, 2 }
  0x3c   :  { %1338 = vmatmul.mubr.msk.f32.gmra.mxu1 %vm157_vm1, %v1582_v31  ;;  %1308 = vmatprep.mubr.msk.f32.mxu0 %vm157_vm1, %v139_v54  ;;  %v534_v54 = vrot.slane %v1582_v31, 2  ;;  %v771_v28 = vsel %vm756_vm3, %v768_v46, %v770_v18  ;;  %v539_v31 = vrot.slane %v1599_v41, 2  ;;  %v777_v1 = vrot.slane %v1597_v40, 3 }
  0x3d   :  { %1340 = vmatprep.mubr.msk.f32.mxu1 %vm157_vm1, %v1597_v40  ;;  %1358 = vmatprep.subr.mxu0 %v513_v60  ;;  %v778_v2 = vrot.slane %v1599_v41, 3  ;;  %v780_v40 = vrot.slane %v1612_v47, 3  ;;  %v544_v13 = vrot.slane %v1616_v51, 2  ;;  %v782_v19 = vrot.slane %v1614_v50, 3 }
  0x3e   :  { %1390 = vmatprep.subr.mxu1 %v752_v61  ;;  %1359 = vmatpush3.msra.mxu0 %v513_v60  ;;  %v532_v60 = vsel %vm517_vm2, %v529_v15, %v531_v17  ;;  %v535_v63 = vsel %vm517_vm2, %v533_v21, %v534_v54  ;;  %v783_v20 = vrot.slane %v1616_v51, 3  ;;  %v546_v23 = vrot.slane %v1629_v57, 2 }
  0x3f   :  { %1391 = vmatpush3.msra.mxu1 %v752_v61  ;;  %1309 = vmatmul.mubr.msk.f32.gmra.mxu0 %vm157_vm1, %v141_v62  ;;  %v536_v61 = vrot.slane %v1593_v38, 2  ;;  %v775_v62 = vrot.slane %v1593_v38, 3  ;;  %v541_v38 = vrot.slane %v1612_v47, 2  ;;  %v779_v12 = vsel %vm756_vm3, %v777_v1, %v778_v2 }
  0x40   :  { %1341 = vmatmul.mubr.msk.f32.gmra.mxu1 %vm157_vm1, %v1599_v41  ;;  %1311 = vmatprep.mubr.msk.f32.mxu0 %vm157_vm1, %v144_v0  ;;  %v774_v0 = vsel %vm756_vm3, %v772_v55, %v773_v56  ;;  %v543_v41 = vrot.slane %v1614_v50, 2  ;;  %v781_v47 = vsel %vm756_vm3, %v778_v2, %v780_v40  ;;  %v785_v24 = vrot.slane %v1629_v57, 3 }
  0x41   :  { %1343 = vmatprep.mubr.msk.f32.mxu1 %vm157_vm1, %v1614_v50  ;;  %v776_v10 = vsel %vm756_vm3, %v773_v56, %v775_v62  ;;  %v548_v50 = vrot.slane %v1631_v58, 2  ;;  %v787_v27 = vrot.slane %v1631_v58, 3  ;;  %v788_v6 = vrot.slane %v1633_v59, 3 }
  0x42   :  { %v545_v25 = vsel %vm517_vm2, %v543_v41, %v544_v13  ;;  %v551_v57 = vrot.slane %v1646_v3, 2  ;;  %v554_v34 = vrot.slane %v1650_v5, 2  ;;  %v792_v35 = vrot.slane %v1648_v4, 3 }
  0x43   :  { %1312 = vmatmul.mubr.msk.f32.gmra.mxu0 %vm157_vm1, %v146_v8  ;;  %v537_v8 = vsel %vm517_vm2, %v534_v54, %v536_v61  ;;  %v789_v33 = vsel %vm756_vm3, %v787_v27, %v788_v6  ;;  %v793_v36 = vrot.slane %v1650_v5, 3  ;;  %v556_v37 = vrot.slane %v1663_v16, 2 }
  0x44   :  { %1344 = vmatmul.mubr.msk.f32.gmra.mxu1 %vm157_vm1, %v1616_v51  ;;  %1314 = vmatprep.mubr.msk.f32.mxu0 %vm157_vm1, %v149_v11  ;;  %v540_v11 = vsel %vm517_vm2, %v538_v30, %v539_v31  ;;  %v549_v51 = vrot.slane %v1633_v59, 2 }
  0x45   :  { %1346 = vmatprep.mubr.msk.f32.mxu1 %vm157_vm1, %v1631_v58  ;;  %v790_v58 = vrot.slane %v1646_v3, 3  ;;  %v557_v42 = vsel %vm517_vm2, %v554_v34, %v556_v37 }
  0x47   :  { %1315 = vmatmul.mubr.msk.f32.gmra.mxu0 %vm157_vm1, %v151_v22  ;;  %v542_v22 = vsel %vm517_vm2, %v539_v31, %v541_v38  ;;  %v791_v3 = vsel %vm756_vm3, %v788_v6, %v790_v58 }
  0x48   :  { %1347 = vmatmul.mubr.msk.f32.gmra.mxu1 %vm157_vm1, %v1633_v59  ;;  %1317 = vmatprep.mubr.msk.f32.mxu0 %vm157_vm1, %v154_v26  ;;  %v784_v26 = vsel %vm756_vm3, %v782_v19, %v783_v20  ;;  %v553_v59 = vrot.slane %v1648_v4, 2 }
  0x49   :  { %1349 = vmatprep.mubr.msk.f32.mxu1 %vm157_vm1, %v1648_v4 }
  0x4a   :  { %v555_v4 = vsel %vm517_vm2, %v553_v59, %v554_v34 }
  0x4b   :  { %1318 = vmatmul.mubr.msk.f32.gmra.mxu0 %vm157_vm1, %v156_v7  ;;  %v547_v7 = vsel %vm517_vm2, %v544_v13, %v546_v23 }
  0x4c   :  { %1350 = vmatmul.mubr.msk.f32.gmra.mxu1 %vm157_vm1, %v1650_v5  ;;  %1360 = vmatprep.mubr.msk.f32.mxu0 %vm157_vm1, %v520_v29  ;;  %v786_v29 = vsel %vm756_vm3, %v783_v20, %v785_v24  ;;  %v794_v5 = vsel %vm756_vm3, %v792_v35, %v793_v36 }
  0x4d   :  { %1392 = vmatprep.mubr.msk.f32.mxu1 %vm157_vm1, %v759_v32  ;;  %v550_v32 = vsel %vm517_vm2, %v548_v50, %v549_v51 }
  0x4f   :  { %1361 = vmatmul.mubr.msk.f32.vlgmr.msra.gmra.mxu0 %vm157_vm1, %v522_v9  ;;  %v552_v9 = vsel %vm517_vm2, %v549_v51, %v551_v57 }
  0x50   :  { %1393 = vmatmul.mubr.msk.f32.vlgmr.msra.gmra.mxu1 %vm157_vm1, %v761_v39  ;;  %1363 = vmatprep.mubr.msk.f32.mxu0 %vm157_vm1, %v525_v43  ;;  %v795_v39 = vrot.slane %v1663_v16, 3 }
  0x51   :  { %1395 = vmatprep.mubr.msk.f32.mxu1 %vm157_vm1, %v764_v44 }
  0x52   :  { %v796_v14 = vsel %vm756_vm3, %v793_v36, %v795_v39 }
  0x53   :  { %1364 = vmatmul.mubr.msk.f32.gmra.mxu0 %vm157_vm1, %v527_v48 }
  0x54   :  { %1396 = vmatmul.mubr.msk.f32.gmra.mxu1 %vm157_vm1, %v766_v49  ;;  %1366 = vmatprep.mubr.msk.f32.mxu0 %vm157_vm1, %v530_v52 }
  0x55   :  { %1398 = vmatprep.mubr.msk.f32.mxu1 %vm157_vm1, %v769_v53 }
  0x57   :  { %1367 = vmatmul.mubr.msk.f32.gmra.mxu0 %vm157_vm1, %v532_v60 }
  0x58   :  { %1399 = vmatmul.mubr.msk.f32.gmra.mxu1 %vm157_vm1, %v771_v28  ;;  %1369 = vmatprep.mubr.msk.f32.mxu0 %vm157_vm1, %v535_v63 }
  0x59   :  { %1401 = vmatprep.mubr.msk.f32.mxu1 %vm157_vm1, %v774_v0 }
  0x5b   :  { %1370 = vmatmul.mubr.msk.f32.gmra.mxu0 %vm157_vm1, %v537_v8 }
  0x5c   :  { %1402 = vmatmul.mubr.msk.f32.gmra.mxu1 %vm157_vm1, %v776_v10  ;;  %1372 = vmatprep.mubr.msk.f32.mxu0 %vm157_vm1, %v540_v11 }
  0x5d   :  { %1404 = vmatprep.mubr.msk.f32.mxu1 %vm157_vm1, %v779_v12 }
  0x5f   :  { %1373 = vmatmul.mubr.msk.f32.gmra.mxu0 %vm157_vm1, %v542_v22 }
  0x60   :  { %1405 = vmatmul.mubr.msk.f32.gmra.mxu1 %vm157_vm1, %v781_v47  ;;  %1375 = vmatprep.mubr.msk.f32.mxu0 %vm157_vm1, %v545_v25 }
  0x61   :  { %1407 = vmatprep.mubr.msk.f32.mxu1 %vm157_vm1, %v784_v26 }
  0x63   :  { %1376 = vmatmul.mubr.msk.f32.gmra.mxu0 %vm157_vm1, %v547_v7 }
  0x64   :  { %1408 = vmatmul.mubr.msk.f32.gmra.mxu1 %vm157_vm1, %v786_v29  ;;  %1378 = vmatprep.mubr.msk.f32.mxu0 %vm157_vm1, %v550_v32 }
  0x65   :  { %1410 = vmatprep.mubr.msk.f32.mxu1 %vm157_vm1, %v789_v33  ;;  %v1831_v33 = vld [vmem:[%s1890_s2] ss:$0 sm:$0xff]  ;;  %s1513_s2 = smov [#allocation8]  }
  0x66   :  { %s1133_s5 = sshll.u32 %s1513_s2, 4  ;;  %s1134_s5 = int_to_ptr.vmem [resolvable:$true] %s1133_s5 }
  0x67   :  { %1379 = vmatmul.mubr.msk.f32.gmra.mxu0 %vm157_vm1, %v552_v9  ;;  %s1482_s6 = scalar_lea.vmem %s1134_s5, 128  ;;  %p1487_p2 = scmp.lt.s32.totalorder %s1134_s5, %s1134_s5 }
  0x68   :  { %1411 = vmatmul.mubr.msk.f32.gmra.mxu1 %vm157_vm1, %v791_v3  ;;  %1381 = vmatprep.mubr.msk.f32.mxu0 %vm157_vm1, %v555_v4  ;;  %p1483_p1 = scmp.ne.s32.totalorder %s1134_s5, %s1482_s6  ;;  %p1488_p3 = scmp.lt.s32.totalorder %s1482_s6, %s1482_s6 }
  0x69   :  { %1413 = vmatprep.mubr.msk.f32.mxu1 %vm157_vm1, %v794_v5 }
  0x6a   :  { %p1489_p4 = por %p1488_p3, %p1487_p2 }
  0x6b   :  { %1382 = vmatmul.mubr.msk.f32.gmra.mxu0 %vm157_vm1, %v557_v42 }
  0x6c   :  { %1414 = vmatmul.mubr.msk.f32.gmra.mxu1 %vm157_vm1, %v796_v14  ;;  %p1490_p5 = pnand %p1489_p4, %p1483_p1 }
  0xef   :  { %v1298_v16 = vpop.f32.mrf.mxu0 }
  0xf0   :  { %v1330_v15 = vpop.f32.mrf.mxu1 }
  0xf1   :  { %v256_v43 = vpop.f32.mrf.mxu0  ;;  %v439_v19 = vadd.f32 %v1330_v15, %v1298_v16 }
  0xf2   :  { %v433_v44 = vpop.f32.mrf.mxu1 }
  0xf3   :  { %v1301_v45 = vpop.f32.mrf.mxu0  ;;  %v434_v20 = vadd.f32 %v433_v44, %v256_v43 }
  0xf4   :  { %v1333_v46 = vpop.f32.mrf.mxu1 }
  0xf5   :  { %v266_v48 = vpop.f32.mrf.mxu0  ;;  %v449_v47 = vadd.f32 %v1333_v46, %v1301_v45 }
  0xf6   :  { %v443_v17 = vpop.f32.mrf.mxu1 }
  0xf7   :  { %v1304_v49 = vpop.f32.mrf.mxu0  ;;  %v444_v26 = vadd.f32 %v443_v17, %v266_v48 }
  0xf8   :  { %v1336_v52 = vpop.f32.mrf.mxu1 }
  0xf9   :  { %v276_v18 = vpop.f32.mrf.mxu0  ;;  %v459_v59 = vadd.f32 %v1336_v52, %v1304_v49  ;;  %v1837_v52 = vld [vmem:[#allocation7] sm:$0xff] }
  0xfa   :  { %v453_v21 = vpop.f32.mrf.mxu1 }
  0xfb   :  { %v1307_v53 = vpop.f32.mrf.mxu0  ;;  %v454_v36 = vadd.f32 %v453_v21, %v276_v18 }
  0xfc   :  { %v1339_v54 = vpop.f32.mrf.mxu1 }
  0xfd   :  { %v286_v55 = vpop.f32.mrf.mxu0  ;;  %v469_v15 = vadd.f32 %v1339_v54, %v1307_v53  ;;  %v1843_v54 = vld [vmem:[#allocation7 + $0x8] sm:$0xff] }
  0xfe   :  { %v463_v56 = vpop.f32.mrf.mxu1 }
  0xff   :  { %v1796_v60 = vpop.f32.mrf.mxu0  ;;  %v464_v46 = vadd.f32 %v463_v56, %v286_v55 }
 0x100   :  { %v1798_v61 = vpop.f32.mrf.mxu1 }
 0x101   :  { %v1800_v28 = vpop.f32.mrf.mxu0  ;;  %v479_v53 = vadd.f32 %v1798_v61, %v1796_v60 }
 0x102   :  { %v1802_v62 = vpop.f32.mrf.mxu1 }
 0x103   :  { %v1804_v30 = vpop.f32.mrf.mxu0 }
 0x104   :  { %v1806_v31 = vpop.f32.mrf.mxu1 }
 0x105   :  { %v1808_v63 = vpop.f32.mrf.mxu0 }
 0x106   :  { %v1810_v0 = vpop.f32.mrf.mxu1 }
 0x107   :  { %v1812_v1 = vpop.f32.mrf.mxu0 }
 0x108   :  { %v1814_v2 = vpop.f32.mrf.mxu1 }
 0x109   :  { %v1816_v8 = vpop.f32.mrf.mxu0 }
 0x10a   :  { %v1818_v38 = vpop.f32.mrf.mxu1 }
 0x10b   :  { %v1820_v10 = vpop.f32.mrf.mxu0 }
 0x10c   :  { %v1822_v11 = vpop.f32.mrf.mxu1 }
 0x10d   :  { %v1824_v40 = vpop.f32.mrf.mxu0 }
 0x10e   :  { %v1826_v41 = vpop.f32.mrf.mxu1 }
 0x10f   :  { %v1362_v12 = vpop.f32.mrf.mxu0 }
 0x110   :  { %v1394_v13 = vpop.f32.mrf.mxu1  ;;  %v736_v24 = vadd.f32 %v1362_v12, %v439_v19 }
 0x111   :  { %v656_v22 = vpop.f32.mrf.mxu0 }
 0x112   :  { %v895_v23 = vpop.f32.mrf.mxu1  ;;  %v735_v50 = vadd.f32 %v656_v22, %v434_v20  ;;  %v975_v29 = vadd.f32 %v1394_v13, %v736_v24 }
 0x113   :  { %v1365_v51 = vpop.f32.mrf.mxu0 }
 0x114   :  { %v1397_v25 = vpop.f32.mrf.mxu1  ;;  %v974_v27 = vadd.f32 %v895_v23, %v735_v50  ;;  %v738_v6 = vadd.f32 %v1365_v51, %v449_v47  ;;  %v998_v5 = vadd.f32 %v1831_v33, %v975_v29 }
 0x115   :  { %v666_v7 = vpop.f32.mrf.mxu0 }
 0x116   :  { %v905_v57 = vpop.f32.mrf.mxu1  ;;  %v977_v32 = vadd.f32 %v1397_v25, %v738_v6  ;;  %v737_v58 = vadd.f32 %v666_v7, %v444_v26  ;;  %v997_v9 = vadd.f32 %v1831_v33, %v974_v27  ;;  %v1014_v19 = vmax.f32 %v998_v5, 0.0 }
 0x117   :  { %v1368_v34 = vpop.f32.mrf.mxu0  ;;  %v474_v27 = vadd.f32 %v1802_v62, %v1800_v28  ;;  %v489_v6 = vadd.f32 %v1806_v31, %v1804_v30  ;;  %v484_v31 = vadd.f32 %v1810_v0, %v1808_v63 }
 0x118   :  { %v1400_v35 = vpop.f32.mrf.mxu1  ;;  %v976_v3 = vadd.f32 %v905_v57, %v737_v58  ;;  %v740_v37 = vadd.f32 %v1368_v34, %v459_v59  ;;  %v1000_v42 = vadd.f32 %v1831_v33, %v977_v32  ;;  %v1013_v48 = vmax.f32 %v997_v9, 0.0 }
 0x119   :  { %v676_v39 = vpop.f32.mrf.mxu0  ;;  %v1032_v29 = vmul.f32 %v1843_v54, %v1014_v19 }
 0x11a   :  { %v915_v4 = vpop.f32.mrf.mxu1  ;;  %v999_v14 = vadd.f32 %v1831_v33, %v976_v3  ;;  %v739_v16 = vadd.f32 %v676_v39, %v454_v36  ;;  %v979_v43 = vadd.f32 %v1400_v35, %v740_v37  ;;  %v1016_v20 = vmax.f32 %v1000_v42, 0.0 }
 0x11b   :  { %v1371_v44 = vpop.f32.mrf.mxu0  ;;  %v1031_v50 = vmul.f32 %v1837_v52, %v1013_v48 }
 0x11c   :  { %v1403_v45 = vpop.f32.mrf.mxu1  ;;  %v1015_v17 = vmax.f32 %v999_v14, 0.0  ;;  %v978_v49 = vadd.f32 %v915_v4, %v739_v16  ;;  %v1002_v18 = vadd.f32 %v1831_v33, %v979_v43  ;;  %v742_v21 = vadd.f32 %v1371_v44, %v469_v15 }
 0x11d   :  { %v686_v12 = vpop.f32.mrf.mxu0  ;;  %v1034_v32 = vmul.f32 %v1843_v54, %v1016_v20  ;;  %v1047_v9 = vmax.f32 %v1031_v50, %v1032_v29  ;;  %v499_v15 = vadd.f32 %v1814_v2, %v1812_v1 }
 0x11e   :  { %v925_v13 = vpop.f32.mrf.mxu1  ;;  %v1001_v22 = vadd.f32 %v1831_v33, %v978_v49  ;;  %v741_v23 = vadd.f32 %v686_v12, %v464_v46  ;;  %v1018_v55 = vmax.f32 %v1002_v18, 0.0  ;;  %v981_v56 = vadd.f32 %v1403_v45, %v742_v21 }
 0x11f   :  { %v1374_v47 = vpop.f32.mrf.mxu0  ;;  %v1033_v51 = vmul.f32 %v1837_v52, %v1015_v17  ;;  %v494_v49 = vadd.f32 %v1818_v38, %v1816_v8  ;;  %v1048_v18 = vrot.slane %v1047_v9, 4 }
 0x120   :  { %v1406_v24 = vpop.f32.mrf.mxu1  ;;  %v1017_v25 = vmax.f32 %v1001_v22, 0.0  ;;  %v980_v26 = vadd.f32 %v925_v13, %v741_v23  ;;  %v1004_v60 = vadd.f32 %v1831_v33, %v981_v56  ;;  %v744_v61 = vadd.f32 %v1374_v47, %v479_v53 }
 0x121   :  { %v696_v7 = vpop.f32.mrf.mxu0  ;;  %v1036_v34 = vmul.f32 %v1843_v54, %v1018_v55  ;;  %v1054_v3 = vmax.f32 %v1033_v51, %v1034_v32  ;;  %v509_v23 = vadd.f32 %v1822_v11, %v1820_v10  ;;  %v504_v51 = vadd.f32 %v1826_v41, %v1824_v40 }
 0x122   :  { %v935_v57 = vpop.f32.mrf.mxu1  ;;  %v1035_v58 = vmul.f32 %v1837_v52, %v1017_v25  ;;  %v1003_v59 = vadd.f32 %v1831_v33, %v980_v26  ;;  %v1020_v35 = vmax.f32 %v1004_v60, 0.0  ;;  %v983_v28 = vadd.f32 %v1406_v24, %v744_v61 }
 0x123   :  { %v743_v62 = vadd.f32 %v696_v7, %v474_v27  ;;  %v1377_v36 = vpop.f32.mrf.mxu0  ;;  %v1055_v21 = vrot.slane %v1054_v3, 4  ;;  %v1049_v25 = vmax.f32 %v1047_v9, %v1048_v18 }
 0x124   :  { %v1409_v30 = vpop.f32.mrf.mxu1  ;;  %v1019_v37 = vmax.f32 %v1003_v59, 0.0  ;;  %v1061_v39 = vmax.f32 %v1035_v58, %v1036_v34  ;;  %v1006_v4 = vadd.f32 %v1831_v33, %v983_v28  ;;  %v746_v42 = vadd.f32 %v1377_v36, %v489_v6 }
 0x125   :  { %v982_v5 = vadd.f32 %v935_v57, %v743_v62  ;;  %v706_v14 = vpop.f32.mrf.mxu0  ;;  %v1038_v43 = vmul.f32 %v1843_v54, %v1020_v35  ;;  %v1056_v26 = vmax.f32 %v1054_v3, %v1055_v21 }
 0x126   :  { %v945_v16 = vpop.f32.mrf.mxu1  ;;  %v1037_v44 = vmul.f32 %v1837_v52, %v1019_v37  ;;  %v1022_v45 = vmax.f32 %v1006_v4, 0.0  ;;  %v985_v0 = vadd.f32 %v1409_v30, %v746_v42  ;;  %v745_v46 = vadd.f32 %v706_v14, %v484_v31 }
 0x127   :  { %v1005_v63 = vadd.f32 %v1831_v33, %v982_v5  ;;  %v1380_v48 = vpop.f32.mrf.mxu0  ;;  %v1062_v13 = vrot.slane %v1061_v39, 4  ;;  %v1057_v35 = vrot.slane %v1056_v26, 2  ;;  %v1050_v37 = vrot.slane %v1049_v25, 2 }
 0x128   :  { %v1412_v17 = vpop.f32.mrf.mxu1  ;;  %v1068_v12 = vmax.f32 %v1037_v44, %v1038_v43  ;;  %v1008_v1 = vadd.f32 %v1831_v33, %v985_v0  ;;  %v984_v2 = vadd.f32 %v945_v16, %v745_v46  ;;  %v1040_v55 = vmul.f32 %v1843_v54, %v1022_v45 }
 0x129   :  { %v1021_v19 = vmax.f32 %v1005_v63, 0.0  ;;  %v716_v20 = vpop.f32.mrf.mxu0  ;;  %v748_v56 = vadd.f32 %v1380_v48, %v499_v15  ;;  %v1063_v60 = vmax.f32 %v1061_v39, %v1062_v13  ;;  %v1058_v45 = vmax.f32 %v1056_v26, %v1057_v35 }
 0x12a   :  { %v955_v22 = vpop.f32.mrf.mxu1  ;;  %v1069_v53 = vrot.slane %v1068_v12, 4  ;;  %v1024_v8 = vmax.f32 %v1008_v1, 0.0  ;;  %v1007_v38 = vadd.f32 %v1831_v33, %v984_v2  ;;  %v747_v24 = vadd.f32 %v716_v20, %v494_v49 }
 0x12b   :  { %v1039_v47 = vmul.f32 %v1837_v52, %v1021_v19  ;;  %v1383_v50 = vpop.f32.mrf.mxu0  ;;  %v987_v27 = vadd.f32 %v1412_v17, %v748_v56  ;;  %v1064_v39 = vrot.slane %v1063_v60, 2  ;;  %v1051_v48 = vmax.f32 %v1049_v25, %v1050_v37 }
 0x12c   :  { %v1415_v6 = vpop.f32.mrf.mxu1  ;;  %v1023_v11 = vmax.f32 %v1007_v38, 0.0  ;;  %v986_v61 = vadd.f32 %v955_v22, %v747_v24  ;;  %v1070_v57 = vmax.f32 %v1068_v12, %v1069_v53  ;;  %v1042_v29 = vmul.f32 %v1843_v54, %v1024_v8 }
 0x12d   :  { %v1075_v10 = vmax.f32 %v1039_v47, %v1040_v55  ;;  %v726_v7 = vpop.f32.mrf.mxu0  ;;  %v1010_v32 = vadd.f32 %v1831_v33, %v987_v27  ;;  %v750_v58 = vadd.f32 %v1383_v50, %v509_v23  ;;  %v1065_v17 = vmax.f32 %v1063_v60, %v1064_v39 }
 0x12e   :  { %v1041_v34 = vmul.f32 %v1837_v52, %v1023_v11  ;;  %v1009_v40 = vadd.f32 %v1831_v33, %v986_v61  ;;  %v749_v41 = vadd.f32 %v726_v7, %v504_v51  ;;  %v965_v36 = vpop.f32.mrf.mxu1  ;;  %v1071_v4 = vrot.slane %v1070_v57, 2 }
 0x12f   :  { %v1076_v59 = vrot.slane %v1075_v10, 4  ;;  %v1026_v28 = vmax.f32 %v1010_v32, 0.0  ;;  %v989_v62 = vadd.f32 %v1415_v6, %v750_v58  ;;  %v1059_v1 = vrot.slane %v1058_v45, 1 }
 0x130   :  { %v1082_v31 = vmax.f32 %v1041_v34, %v1042_v29  ;;  %v1025_v9 = vmax.f32 %v1009_v40, 0.0  ;;  %v988_v3 = vadd.f32 %v965_v36, %v749_v41  ;;  %v1072_v49 = vmax.f32 %v1070_v57, %v1071_v4 }
 0x131   :  { %v1077_v30 = vmax.f32 %v1075_v10, %v1076_v59  ;;  %v1012_v5 = vadd.f32 %v1831_v33, %v989_v62  ;;  %v1044_v14 = vmul.f32 %v1843_v54, %v1026_v28  ;;  %v1066_v22 = vrot.slane %v1065_v17, 1 }
 0x132   :  { %v1083_v42 = vrot.slane %v1082_v31, 4  ;;  %v1043_v16 = vmul.f32 %v1837_v52, %v1025_v9  ;;  %v1011_v15 = vadd.f32 %v1831_v33, %v988_v3  ;;  %v1052_v23 = vrot.slane %v1051_v48, 1 }
 0x133   :  { %v1078_v43 = vrot.slane %v1077_v30, 2  ;;  %v1028_v44 = vmax.f32 %v1012_v5, 0.0  ;;  %v1073_v53 = vrot.slane %v1072_v49, 1  ;;  %v1060_v8 = vmax.f32 %v1058_v45, %v1059_v1 }
 0x134   :  { %v1084_v63 = vmax.f32 %v1082_v31, %v1083_v42  ;;  %v1089_v0 = vmax.f32 %v1043_v16, %v1044_v14  ;;  %v1027_v46 = vmax.f32 %v1011_v15, 0.0  ;;  %v1067_v51 = vmax.f32 %v1065_v17, %v1066_v22 }
 0x135   :  { %v1046_v12 = vmul.f32 %v1843_v54, %v1028_v44  ;;  %v1079_v19 = vmax.f32 %v1077_v30, %v1078_v43  ;;  %v1053_v54 = vmax.f32 %v1051_v48, %v1052_v23 }
 0x136   :  { %v1085_v18 = vrot.slane %v1084_v63, 2  ;;  %v1090_v21 = vrot.slane %v1089_v0, 4  ;;  %v1045_v13 = vmul.f32 %v1837_v52, %v1027_v46  ;;  %v1074_v52 = vmax.f32 %v1072_v49, %v1073_v53 }
 0x137   :  { %v1080_v47 = vrot.slane %v1079_v19, 1  ;;  %v1112_v10 = vsel %vm1111_vm4, %v1060_v8, %v1053_v54 }
 0x138   :  { %v1086_v2 = vmax.f32 %v1084_v63, %v1085_v18  ;;  %v1091_v20 = vmax.f32 %v1089_v0, %v1090_v21  ;;  %v1096_v33 = vmax.f32 %v1045_v13, %v1046_v12  ;;  %v1114_v61 = vsel %vm1113_vm5, %v1067_v51, %v1112_v10 }
 0x139   :  { %v1081_v27 = vmax.f32 %v1079_v19, %v1080_v47  ;;  %v1116_v57 = vsel %vm1115_vm6, %v1074_v52, %v1114_v61 }
 0x13a   :  { %v1092_v55 = vrot.slane %v1091_v20, 2  ;;  %v1097_v56 = vrot.slane %v1096_v33, 4  ;;  %v1087_v38 = vrot.slane %v1086_v2, 1 }
 0x13b   :  { %v1118_v29 = vsel %vm1117_vm7, %v1081_v27, %v1116_v57 }
 0x13c   :  { %v1093_v24 = vmax.f32 %v1091_v20, %v1092_v55  ;;  %v1098_v50 = vmax.f32 %v1096_v33, %v1097_v56  ;;  %v1088_v6 = vmax.f32 %v1086_v2, %v1087_v38 }
 0x13e   :  { %v1099_v25 = vrot.slane %v1098_v50, 2  ;;  %v1094_v26 = vrot.slane %v1093_v24, 1  ;;  %v1120_v58 = vsel %vm1119_vm8, %v1088_v6, %v1118_v29 }
 0x140   :  { %v1100_v60 = vmax.f32 %v1098_v50, %v1099_v25  ;;  %v1095_v11 = vmax.f32 %v1093_v24, %v1094_v26 }
 0x142   :  { %v1101_v7 = vrot.slane %v1100_v60, 1  ;;  %v1122_v59 = vsel %vm1121_vm9, %v1095_v11, %v1120_v58 }
 0x144   :  { %v1102_v32 = vmax.f32 %v1100_v60, %v1101_v7 }
 0x146   :  { %v1124_v34 = vsel %vm1123_vm10, %v1102_v32, %v1122_v59 }
 0x147   :  { %1126 = vst [vmem:[#allocation8] sm:$0xff] %v1124_v34 }
 0x148   :  { %1493 = shalt.err (!%p1490_p5)
}
 0x149   :  { %1136 = dma.vmem_to_hbm [thread:$0]  %s1134_s5, 128, %s1892_s4, [#allocation4]  }
 0x14a   :  { %1506 = dma.done.wait [#allocation4], 128  }
 0x14b   :  { %1507 = vsyncadd [#allocation4], 4294967168 }
 0x14c   :  { %1140 = vsyncpa [#allocation3], 1 }
 0x14d   :  { %1141 = vsyncpa [#allocation6], 1 }
 0x14e   :  { %1142 = vsyncpa [#allocation4], 1 }

</bundles_post_ra>
